<compile_context>
chip_gen: v7x
topology: tpu7x:2x2x1
jax: 0.10.0
libtpu: 0.0.40
codegen_flags: <defaults>
</compile_context>

<pallas_src>
import functools

import jax
import jax.numpy as jnp
from jax.experimental import pallas as pl
from jax.experimental.pallas import tpu as pltpu


# ----------------------------------------------------------------------------
# Kernel 1: fused 1x1 conv, channel-major.  out[f] = W^T @ x[f] + b.
# Input frames keep their NCHW layout (no entry transpose); bf16 cast happens
# in-kernel; f32 MXU accumulation; bf16 activation store; HW on the lane axis.
# ----------------------------------------------------------------------------
def _conv1x1_cm_kernel(x_ref, wt_ref, b_ref, o_ref):
    x = x_ref[...].astype(jnp.bfloat16)                     # (C_in, HW)
    acc = jnp.dot(wt_ref[...], x, preferred_element_type=jnp.float32)
    o_ref[...] = (acc + b_ref[...]).astype(o_ref.dtype)     # (N, HW)


def conv1x1_cm(x, wt, b, out_dtype=jnp.bfloat16):
    """x: (F, C_in, HW) f32, wt: (N, C_in), b: (N, 1) -> (F, N, HW)."""
    F, C_in, HW = x.shape
    N = wt.shape[0]
    return pl.pallas_call(
        _conv1x1_cm_kernel,
        out_shape=jax.ShapeDtypeStruct((F, N, HW), out_dtype),
        grid=(F,),
        in_specs=[
            pl.BlockSpec((None, C_in, HW), lambda f: (f, 0, 0)),
            pl.BlockSpec((N, C_in), lambda f: (0, 0)),       # weights resident
            pl.BlockSpec((N, 1), lambda f: (0, 0)),
        ],
        out_specs=pl.BlockSpec((None, N, HW), lambda f: (f, 0, 0)),
        compiler_params=pltpu.CompilerParams(dimension_semantics=("parallel",)),
    )(x, wt.astype(jnp.bfloat16), b.astype(jnp.float32))


# ----------------------------------------------------------------------------
# Kernel 2: filter predictor — (label + 0.1*mean_k(heatmap))-weighted pooling
# of the train features, one filter per sequence.  One block per sequence
# (all train frames collapsed), heatmaps consumed channel-major (no transpose),
# heatmap mean via a free sublane reduce, pooling as a batched MXU matmul with
# l_eff kept in f32.
# ----------------------------------------------------------------------------
def _filter_pred_kernel(y_ref, lab_ref, filt_ref, *, num_feat, kh_scale):
    y = y_ref[...].astype(jnp.float32)                       # (T, N, HW)
    lab = lab_ref[...]                                       # (T, 1, HW) f32
    kh = y[:, num_feat:, :]                                  # (T, K, HW)
    l_eff = lab + kh_scale * jnp.sum(kh, axis=1, keepdims=True)   # (T, 1, HW)
    # num[n] = sum_{t,h} l_eff[t,0,h] * y[t,n,h]  (batched matmul over frames)
    num = jnp.einsum("tqh,tnh->tqn", l_eff, y,
                     preferred_element_type=jnp.float32)     # (T, 1, N)
    num = jnp.sum(num, axis=0)                               # (1, N)
    den = jnp.sum(l_eff)
    den = jnp.where(den >= 0.0, jnp.maximum(den, 1e-6), jnp.minimum(den, -1e-6))
    filt_ref[...] = num / den


def predict_filter(y_tr4, lab4, num_feat, num_kpt):
    T, S, N, HW = y_tr4.shape
    kernel = functools.partial(_filter_pred_kernel, num_feat=num_feat,
                               kh_scale=0.1 / num_kpt)
    return pl.pallas_call(
        kernel,
        out_shape=jax.ShapeDtypeStruct((S, 1, N), jnp.float32),
        grid=(S,),
        in_specs=[
            pl.BlockSpec((T, None, N, HW), lambda s: (0, s, 0, 0)),
            pl.BlockSpec((T, None, 1, HW), lambda s: (0, s, 0, 0)),
        ],
        out_specs=pl.BlockSpec((None, 1, N), lambda s: (s, 0, 0)),
        compiler_params=pltpu.CompilerParams(dimension_semantics=("parallel",)),
    )(y_tr4, lab4)


# ----------------------------------------------------------------------------
# Kernel 3: fused classifier / classifier_kpt / bb_regressor / kpt_regressor.
# Per sequence: out[t] = W_all^T (P, N) @ feat[t] (N, HW) + hb (P, HW).
# Lane-dense (HW) stores; filter weights / heatmap slab DMA'd once per
# sequence; test frames folded into the block.
# ----------------------------------------------------------------------------
def _head_apply_kernel(y_ref, w_ref, hb_ref, o_ref, *, num_test):
    w = w_ref[...]                                           # (P, N) bf16
    hb = hb_ref[...]                                         # (P, HW) f32
    for t in range(num_test):                                # static, small
        o_ref[t] = jnp.dot(w, y_ref[t], preferred_element_type=jnp.float32) + hb


def apply_heads(y_te4, w_allT, hb):
    Te, S, N, HW = y_te4.shape
    P = w_allT.shape[1]
    kernel = functools.partial(_head_apply_kernel, num_test=Te)
    return pl.pallas_call(
        kernel,
        out_shape=jax.ShapeDtypeStruct((Te, S, P, HW), jnp.float32),
        grid=(S,),
        in_specs=[
            pl.BlockSpec((Te, None, N, HW), lambda s: (0, s, 0, 0)),
            pl.BlockSpec((None, P, N), lambda s: (s, 0, 0)),
            pl.BlockSpec((None, P, HW), lambda s: (s, 0, 0)),
        ],
        out_specs=pl.BlockSpec((Te, None, P, HW), lambda s: (0, s, 0, 0)),
        compiler_params=pltpu.CompilerParams(dimension_semantics=("parallel",)),
    )(y_te4, w_allT, hb)


# ----------------------------------------------------------------------------
# Parameter init (deterministic) and forward pass (Head.forward semantics)
# ----------------------------------------------------------------------------
def init_params(key, c_in, c, k):
    ks = jax.random.split(key, 10)
    s = 0.1
    return {
        "w_fe": s * jax.random.normal(ks[0], (c_in, c), jnp.float32),
        "b_fe": s * jax.random.normal(ks[1], (c,), jnp.float32),
        "w_enc": s * jax.random.normal(ks[2], (c, c), jnp.float32),
        "b_enc": s * jax.random.normal(ks[3], (c,), jnp.float32),
        "w_kh": s * jax.random.normal(ks[4], (c, k), jnp.float32),
        "b_kh": s * jax.random.normal(ks[5], (k,), jnp.float32),
        "g_cls": 1.0 + s * jax.random.normal(ks[6], (1, c), jnp.float32),
        "g_ckpt": 1.0 + s * jax.random.normal(ks[7], (1, c), jnp.float32),
        "w_bb": s * jax.random.normal(ks[8], (c, 4), jnp.float32),
        "b_bb": jnp.zeros((4,), jnp.float32),
        "w_kp": s * jax.random.normal(ks[9], (c, k), jnp.float32),
        "b_kp": jnp.zeros((k,), jnp.float32),
    }


def head_forward(params, train_feat, test_feat, train_bb, train_label):
    assert train_bb.ndim == 3
    S = train_bb.shape[1]                        # num_sequences
    T = train_feat.shape[0]
    Te = test_feat.shape[0]
    C_in, H, W = train_feat.shape[-3:]
    C = params["w_fe"].shape[1]
    K = params["w_kh"].shape[1]
    HW = H * W
    N = C + K

    # --- pre-compose chained 1x1-conv weights; transposed for channel-major ---
    w_fe, b_fe = params["w_fe"], params["b_fe"]
    w_fe_kh = w_fe @ params["w_kh"]
    b_fe_kh = b_fe @ params["w_kh"] + params["b_kh"]
    w_fe_enc = w_fe @ params["w_enc"]
    b_fe_enc = b_fe @ params["w_enc"] + params["b_enc"]

    # train pass produces [extracted features | keypoint heatmaps] in one shot
    Wt_tr = jnp.concatenate([w_fe, w_fe_kh], axis=1).T       # (N, C_in)
    b_tr = jnp.concatenate([b_fe, b_fe_kh]).reshape(N, 1)
    # test pass produces [encoded features | keypoint heatmaps] in one shot
    Wt_te = jnp.concatenate([w_fe_enc, w_fe_kh], axis=1).T   # (N, C_in)
    b_te = jnp.concatenate([b_fe_enc, b_fe_kh]).reshape(N, 1)

    # --- channel-major frames: pure reshapes, no transpose, no dtype pass ---
    x_tr = train_feat.reshape(T * S, C_in, HW)
    x_te = test_feat.reshape(Te * S, C_in, HW)

    y_tr = conv1x1_cm(x_tr, Wt_tr, b_tr).reshape(T, S, N, HW)    # bf16
    y_te = conv1x1_cm(x_te, Wt_te, b_te).reshape(Te, S, N, HW)   # bf16

    # 'gmsp' keypoint-encoding branch, validation path: loss stays 0.
    ftkp_total_loss = jnp.float32(0.0)

    # --- filter predictor (one block per sequence, T collapsed) ---
    lab4 = train_label.reshape(T, S, 1, HW).astype(jnp.float32)
    filt_full = predict_filter(y_tr, lab4, C, K)              # (S, 1, N) f32
    filt = filt_full[:, 0, :C]                                # (S, C)

    # --- per-sequence fused head weights (P, N); kh channels zero-weighted ---
    P = 2 + 4 + K
    w_cls = (filt * params["g_cls"])[:, None, :]              # (S, 1, C)
    w_ckpt = (filt * params["g_ckpt"])[:, None, :]            # (S, 1, C)
    w_bbx = filt[:, None, :] * params["w_bb"].T[None]         # (S, 4, C)
    w_kpt = filt[:, None, :] * params["w_kp"].T[None]         # (S, K, C)
    w_allT = jnp.concatenate([w_cls, w_ckpt, w_bbx, w_kpt], axis=1)  # (S, P, C)
    w_allT = jnp.pad(w_allT, ((0, 0), (0, 0), (0, K))).astype(jnp.bfloat16)

    # bias + heatmap slab, channel-major.  keypoint head on the first test
    # frame: test_hm = keypoint_head(test_feat[0]) used for every test frame.
    te_hm = y_te[0, :, C:, :].astype(jnp.float32)             # (S, K, HW)
    hb = jnp.concatenate([
        jnp.zeros((S, 2, HW), jnp.float32),
        jnp.broadcast_to(params["b_bb"][None, :, None], (S, 4, HW)),
        te_hm + params["b_kp"][None, :, None],
    ], axis=1)                                                # (S, P, HW)

    out = apply_heads(y_te, w_allT, hb)                       # (Te, S, P, HW)

    # channel-major results: no exit transposes, only cheap slices + reshapes
    target_scores = out[:, :, 0, :].reshape(Te, S, H, W)
    target_kpts_scores = out[:, :, 1, :].reshape(Te, S, H, W)
    bbox_preds = out[:, :, 2:6, :].reshape(Te, S, 4, H, W)
    kp_preds = out[:, :, 6:6 + K, :].reshape(Te, S, K, H, W)

    rdict = {"vith_loss": ftkp_total_loss}
    return target_scores, bbox_preds, kp_preds, target_kpts_scores, rdict


if __name__ == "__main__":
    key = jax.random.PRNGKey(0)
    T, Te, S = 2, 1, 2           # train frames, test frames, sequences
    C_in, C, K = 32, 16, 8       # backbone chans, head chans, keypoints
    H = W = 16                   # HW = 256: lane axis is a multiple of 128

    kparams, kin = jax.random.split(key)
    params = init_params(kparams, C_in, C, K)

    k1, k2, k3, k4 = jax.random.split(kin, 4)
    train_feat = jax.random.normal(k1, (T, S, C_in, H, W), jnp.float32)
    test_feat = jax.random.normal(k2, (Te, S, C_in, H, W), jnp.float32)
    train_bb = jax.random.uniform(k3, (T, S, 4), jnp.float32)
    train_label = jax.nn.softmax(
        jax.random.normal(k4, (T, S, H * W), jnp.float32), axis=-1
    ).reshape(T, S, H, W)

    fwd = jax.jit(head_forward)
    outs = fwd(params, train_feat, test_feat, train_bb, train_label)
    jax.block_until_ready(outs)

    ts, bb, kp, tks, rd = outs
    assert ts.shape == (Te, S, H, W)
    assert bb.shape == (Te, S, 4, H, W)
    assert kp.shape == (Te, S, K, H, W)
    assert tks.shape == (Te, S, H, W)
    print("KERNEL_OK")
</pallas_src>

<mosaic_0001>
module attributes {stable_mosaic.version = 11 : i64} {
  func.func @_filter_pred_kernel(%arg0: i32, %arg1: memref<2x1x24x256xbf16, #tpu.memory_space<vmem>>, %arg2: memref<2x1x1x256xf32, #tpu.memory_space<vmem>>, %arg3: memref<1x1x24xf32, #tpu.memory_space<vmem>>) attributes {dimension_semantics = [#tpu.dimension_semantics<parallel>], iteration_bounds = array<i64: 2>, scalar_prefetch = 0 : i64, scratch_operands = 0 : i64, tpu.core_type = #tpu.core_type<tc>, window_params = [{transform_indices = @transform_0, window_bounds = array<i64: 2, 1, 24, 256>}, {transform_indices = @transform_1, window_bounds = array<i64: 2, 1, 1, 256>}, {transform_indices = @transform_2, window_bounds = array<i64: 1, 1, 24>}]} {
    %c0 = arith.constant 0 : index
    %c0_0 = arith.constant 0 : index
    %c0_1 = arith.constant 0 : index
    %c0_2 = arith.constant 0 : index
    %0 = vector.load %arg1[%c0, %c0_0, %c0_1, %c0_2] : memref<2x1x24x256xbf16, #tpu.memory_space<vmem>>, vector<2x1x24x256xbf16>
    %1 = vector.shape_cast %0 : vector<2x1x24x256xbf16> to vector<2x24x256xbf16>
    %2 = arith.extf %1 : vector<2x24x256xbf16> to vector<2x24x256xf32>
    %c0_3 = arith.constant 0 : index
    %c0_4 = arith.constant 0 : index
    %c0_5 = arith.constant 0 : index
    %c0_6 = arith.constant 0 : index
    %3 = vector.load %arg2[%c0_3, %c0_4, %c0_5, %c0_6] : memref<2x1x1x256xf32, #tpu.memory_space<vmem>>, vector<2x1x1x256xf32>
    %4 = vector.shape_cast %3 : vector<2x1x1x256xf32> to vector<2x1x256xf32>
    %5 = vector.extract_strided_slice %2 {offsets = [0, 16, 0], sizes = [2, 8, 256], strides = [1, 1, 1]} : vector<2x24x256xf32> to vector<2x8x256xf32>
    %cst = arith.constant dense<0.000000e+00> : vector<2x256xf32>
    %6 = vector.multi_reduction <add>, %5, %cst [1] : vector<2x8x256xf32> to vector<2x256xf32>
    %7 = vector.shape_cast %6 : vector<2x256xf32> to vector<2x1x256xf32>
    %cst_7 = arith.constant 1.250000e-02 : f32
    %8 = vector.broadcast %cst_7 : f32 to vector<2x1x256xf32>
    %9 = arith.mulf %8, %7 : vector<2x1x256xf32>
    %10 = arith.addf %4, %9 : vector<2x1x256xf32>
    "tpu.trace_start"() <{level = 10 : i32, message = "tqh,tnh->tqn"}> : () -> ()
    %cst_8 = arith.constant dense<0.000000e+00> : vector<2x1x24xf32>
    %11 = tpu.matmul %10, %2, %cst_8 {dimension_numbers = #tpu.dot_dimension_numbers<[2], [2], [1], [1], [0, 0, 0, 1, 1, 1], [0], [0]>} : vector<2x1x256xf32>, vector<2x24x256xf32>, vector<2x1x24xf32> -> vector<2x1x24xf32>
    "tpu.trace_stop"() : () -> ()
    %cst_9 = arith.constant dense<0.000000e+00> : vector<1x24xf32>
    %12 = vector.multi_reduction <add>, %11, %cst_9 [0] : vector<2x1x24xf32> to vector<1x24xf32>
    %13 = vector.shape_cast %10 : vector<2x1x256xf32> to vector<1x2x1x256xf32>
    %cst_10 = arith.constant dense<0.000000e+00> : vector<1xf32>
    %14 = vector.multi_reduction <add>, %13, %cst_10 [1, 2, 3] : vector<1x2x1x256xf32> to vector<1xf32>
    %15 = vector.shape_cast %14 : vector<1xf32> to vector<1x1x1x1xf32>
    %16 = vector.extract %15[0, 0, 0, 0] : f32 from vector<1x1x1x1xf32>
    %cst_11 = arith.constant 0.000000e+00 : f32
    %17 = arith.cmpf oge, %16, %cst_11 : f32
    %cst_12 = arith.constant 9.99999997E-7 : f32
    %18 = arith.maximumf %16, %cst_12 : f32
    %cst_13 = arith.constant -9.99999997E-7 : f32
    %19 = arith.minimumf %16, %cst_13 : f32
    %20 = arith.select %17, %18, %19 : f32
    %21 = vector.broadcast %20 : f32 to vector<1x24xf32>
    %22 = arith.divf %12, %21 : vector<1x24xf32>
    %c0_14 = arith.constant 0 : index
    %c0_15 = arith.constant 0 : index
    %c0_16 = arith.constant 0 : index
    %23 = vector.load %arg3[%c0_14, %c0_15, %c0_16] : memref<1x1x24xf32, #tpu.memory_space<vmem>>, vector<1x1x24xf32>
    %24 = vector.shape_cast %23 : vector<1x1x24xf32> to vector<1x24xf32>
    %25 = vector.shape_cast %22 : vector<1x24xf32> to vector<1x1x24xf32>
    tpu.vector_store %arg3[%c0_14, %c0_15, %c0_16], %25 {strides = array<i32>} : memref<1x1x24xf32, #tpu.memory_space<vmem>>, vector<1x1x24xf32>,
    return
  }
  func.func @transform_0(%arg0: i32) -> (i32, i32, i32, i32) {
    %c0_i32 = arith.constant 0 : i32
    %c0_i32_0 = arith.constant 0 : i32
    %c0_i32_1 = arith.constant 0 : i32
    %c0_i32_2 = arith.constant 0 : i32
    return %c0_i32, %arg0, %c0_i32_0, %c0_i32_1 : i32, i32, i32, i32
  }
  func.func @transform_1(%arg0: i32) -> (i32, i32, i32, i32) {
    %c0_i32 = arith.constant 0 : i32
    %c0_i32_0 = arith.constant 0 : i32
    %c0_i32_1 = arith.constant 0 : i32
    %c0_i32_2 = arith.constant 0 : i32
    return %c0_i32, %arg0, %c0_i32_0, %c0_i32_1 : i32, i32, i32, i32
  }
  func.func @transform_2(%arg0: i32) -> (i32, i32, i32) {
    %c0_i32 = arith.constant 0 : i32
    %c0_i32_0 = arith.constant 0 : i32
    %c0_i32_1 = arith.constant 0 : i32
    return %arg0, %c0_i32, %c0_i32_0 : i32, i32, i32
  }
}

module attributes {stable_mosaic.version = 11 : i64} {
  func.func @_conv1x1_cm_kernel(%arg0: i32, %arg1: memref<1x32x256xf32, #tpu.memory_space<vmem>>, %arg2: memref<24x32xbf16, #tpu.memory_space<vmem>>, %arg3: memref<24x1xf32, #tpu.memory_space<vmem>>, %arg4: memref<1x24x256xbf16, #tpu.memory_space<vmem>>) attributes {dimension_semantics = [#tpu.dimension_semantics<parallel>], iteration_bounds = array<i64: 4>, scalar_prefetch = 0 : i64, scratch_operands = 0 : i64, tpu.core_type = #tpu.core_type<tc>, window_params = [{transform_indices = @transform_0, window_bounds = array<i64: 1, 32, 256>}, {pipeline_mode = #tpu.pipeline_mode<synchronous>, transform_indices = @transform_1, window_bounds = array<i64: 24, 32>}, {pipeline_mode = #tpu.pipeline_mode<synchronous>, transform_indices = @transform_2, window_bounds = array<i64: 24, 1>}, {transform_indices = @transform_3, window_bounds = array<i64: 1, 24, 256>}]} {
    %c0 = arith.constant 0 : index
    %c0_0 = arith.constant 0 : index
    %c0_1 = arith.constant 0 : index
    %0 = vector.load %arg1[%c0, %c0_0, %c0_1] : memref<1x32x256xf32, #tpu.memory_space<vmem>>, vector<1x32x256xf32>
    %1 = vector.shape_cast %0 : vector<1x32x256xf32> to vector<32x256xf32>
    %2 = arith.truncf %1 : vector<32x256xf32> to vector<32x256xbf16>
    %c0_2 = arith.constant 0 : index
    %c0_3 = arith.constant 0 : index
    %3 = vector.load %arg2[%c0_2, %c0_3] : memref<24x32xbf16, #tpu.memory_space<vmem>>, vector<24x32xbf16>
    %cst = arith.constant dense<0.000000e+00> : vector<24x256xf32>
    %4 = tpu.matmul %3, %2, %cst {dimension_numbers = #tpu.dot_dimension_numbers<[1], [0], [0], [1], [0, 0, 1, 1], [], []>} : vector<24x32xbf16>, vector<32x256xbf16>, vector<24x256xf32> -> vector<24x256xf32>
    %c0_4 = arith.constant 0 : index
    %c0_5 = arith.constant 0 : index
    %5 = vector.load %arg3[%c0_4, %c0_5] : memref<24x1xf32, #tpu.memory_space<vmem>>, vector<24x1xf32>
    %6 = vector.broadcast %5 : vector<24x1xf32> to vector<24x256xf32>
    %7 = arith.addf %4, %6 : vector<24x256xf32>
    %8 = arith.truncf %7 : vector<24x256xf32> to vector<24x256xbf16>
    %c0_6 = arith.constant 0 : index
    %c0_7 = arith.constant 0 : index
    %c0_8 = arith.constant 0 : index
    %9 = vector.load %arg4[%c0_6, %c0_7, %c0_8] : memref<1x24x256xbf16, #tpu.memory_space<vmem>>, vector<1x24x256xbf16>
    %10 = vector.shape_cast %9 : vector<1x24x256xbf16> to vector<24x256xbf16>
    %11 = vector.shape_cast %8 : vector<24x256xbf16> to vector<1x24x256xbf16>
    tpu.vector_store %arg4[%c0_6, %c0_7, %c0_8], %11 {strides = array<i32>} : memref<1x24x256xbf16, #tpu.memory_space<vmem>>, vector<1x24x256xbf16>,
    return
  }
  func.func @transform_0(%arg0: i32) -> (i32, i32, i32) {
    %c0_i32 = arith.constant 0 : i32
    %c0_i32_0 = arith.constant 0 : i32
    %c0_i32_1 = arith.constant 0 : i32
    return %arg0, %c0_i32, %c0_i32_0 : i32, i32, i32
  }
  func.func @transform_1(%arg0: i32) -> (i32, i32) {
    %c0_i32 = arith.constant 0 : i32
    %c0_i32_0 = arith.constant 0 : i32
    %c0_i32_1 = arith.constant 0 : i32
    return %c0_i32, %c0_i32_0 : i32, i32
  }
  func.func @transform_2(%arg0: i32) -> (i32, i32) {
    %c0_i32 = arith.constant 0 : i32
    %c0_i32_0 = arith.constant 0 : i32
    %c0_i32_1 = arith.constant 0 : i32
    return %c0_i32, %c0_i32_0 : i32, i32
  }
  func.func @transform_3(%arg0: i32) -> (i32, i32, i32) {
    %c0_i32 = arith.constant 0 : i32
    %c0_i32_0 = arith.constant 0 : i32
    %c0_i32_1 = arith.constant 0 : i32
    return %arg0, %c0_i32, %c0_i32_0 : i32, i32, i32
  }
}

module attributes {stable_mosaic.version = 11 : i64} {
  func.func @_conv1x1_cm_kernel(%arg0: i32, %arg1: memref<1x32x256xf32, #tpu.memory_space<vmem>>, %arg2: memref<24x32xbf16, #tpu.memory_space<vmem>>, %arg3: memref<24x1xf32, #tpu.memory_space<vmem>>, %arg4: memref<1x24x256xbf16, #tpu.memory_space<vmem>>) attributes {dimension_semantics = [#tpu.dimension_semantics<parallel>], iteration_bounds = array<i64: 2>, scalar_prefetch = 0 : i64, scratch_operands = 0 : i64, tpu.core_type = #tpu.core_type<tc>, window_params = [{transform_indices = @transform_0, window_bounds = array<i64: 1, 32, 256>}, {pipeline_mode = #tpu.pipeline_mode<synchronous>, transform_indices = @transform_1, window_bounds = array<i64: 24, 32>}, {pipeline_mode = #tpu.pipeline_mode<synchronous>, transform_indices = @transform_2, window_bounds = array<i64: 24, 1>}, {transform_indices = @transform_3, window_bounds = array<i64: 1, 24, 256>}]} {
    %c0 = arith.constant 0 : index
    %c0_0 = arith.constant 0 : index
    %c0_1 = arith.constant 0 : index
    %0 = vector.load %arg1[%c0, %c0_0, %c0_1] : memref<1x32x256xf32, #tpu.memory_space<vmem>>, vector<1x32x256xf32>
    %1 = vector.shape_cast %0 : vector<1x32x256xf32> to vector<32x256xf32>
    %2 = arith.truncf %1 : vector<32x256xf32> to vector<32x256xbf16>
    %c0_2 = arith.constant 0 : index
    %c0_3 = arith.constant 0 : index
    %3 = vector.load %arg2[%c0_2, %c0_3] : memref<24x32xbf16, #tpu.memory_space<vmem>>, vector<24x32xbf16>
    %cst = arith.constant dense<0.000000e+00> : vector<24x256xf32>
    %4 = tpu.matmul %3, %2, %cst {dimension_numbers = #tpu.dot_dimension_numbers<[1], [0], [0], [1], [0, 0, 1, 1], [], []>} : vector<24x32xbf16>, vector<32x256xbf16>, vector<24x256xf32> -> vector<24x256xf32>
    %c0_4 = arith.constant 0 : index
    %c0_5 = arith.constant 0 : index
    %5 = vector.load %arg3[%c0_4, %c0_5] : memref<24x1xf32, #tpu.memory_space<vmem>>, vector<24x1xf32>
    %6 = vector.broadcast %5 : vector<24x1xf32> to vector<24x256xf32>
    %7 = arith.addf %4, %6 : vector<24x256xf32>
    %8 = arith.truncf %7 : vector<24x256xf32> to vector<24x256xbf16>
    %c0_6 = arith.constant 0 : index
    %c0_7 = arith.constant 0 : index
    %c0_8 = arith.constant 0 : index
    %9 = vector.load %arg4[%c0_6, %c0_7, %c0_8] : memref<1x24x256xbf16, #tpu.memory_space<vmem>>, vector<1x24x256xbf16>
    %10 = vector.shape_cast %9 : vector<1x24x256xbf16> to vector<24x256xbf16>
    %11 = vector.shape_cast %8 : vector<24x256xbf16> to vector<1x24x256xbf16>
    tpu.vector_store %arg4[%c0_6, %c0_7, %c0_8], %11 {strides = array<i32>} : memref<1x24x256xbf16, #tpu.memory_space<vmem>>, vector<1x24x256xbf16>,
    return
  }
  func.func @transform_0(%arg0: i32) -> (i32, i32, i32) {
    %c0_i32 = arith.constant 0 : i32
    %c0_i32_0 = arith.constant 0 : i32
    %c0_i32_1 = arith.constant 0 : i32
    return %arg0, %c0_i32, %c0_i32_0 : i32, i32, i32
  }
  func.func @transform_1(%arg0: i32) -> (i32, i32) {
    %c0_i32 = arith.constant 0 : i32
    %c0_i32_0 = arith.constant 0 : i32
    %c0_i32_1 = arith.constant 0 : i32
    return %c0_i32, %c0_i32_0 : i32, i32
  }
  func.func @transform_2(%arg0: i32) -> (i32, i32) {
    %c0_i32 = arith.constant 0 : i32
    %c0_i32_0 = arith.constant 0 : i32
    %c0_i32_1 = arith.constant 0 : i32
    return %c0_i32, %c0_i32_0 : i32, i32
  }
  func.func @transform_3(%arg0: i32) -> (i32, i32, i32) {
    %c0_i32 = arith.constant 0 : i32
    %c0_i32_0 = arith.constant 0 : i32
    %c0_i32_1 = arith.constant 0 : i32
    return %arg0, %c0_i32, %c0_i32_0 : i32, i32, i32
  }
}

module attributes {stable_mosaic.version = 11 : i64} {
  func.func @_head_apply_kernel(%arg0: i32, %arg1: memref<1x1x24x256xbf16, #tpu.memory_space<vmem>>, %arg2: memref<1x14x24xbf16, #tpu.memory_space<vmem>>, %arg3: memref<1x14x256xf32, #tpu.memory_space<vmem>>, %arg4: memref<1x1x14x256xf32, #tpu.memory_space<vmem>>) attributes {dimension_semantics = [#tpu.dimension_semantics<parallel>], iteration_bounds = array<i64: 2>, scalar_prefetch = 0 : i64, scratch_operands = 0 : i64, tpu.core_type = #tpu.core_type<tc>, window_params = [{transform_indices = @transform_0, window_bounds = array<i64: 1, 1, 24, 256>}, {transform_indices = @transform_1, window_bounds = array<i64: 1, 14, 24>}, {transform_indices = @transform_2, window_bounds = array<i64: 1, 14, 256>}, {transform_indices = @transform_3, window_bounds = array<i64: 1, 1, 14, 256>}]} {
    %c0 = arith.constant 0 : index
    %c0_0 = arith.constant 0 : index
    %c0_1 = arith.constant 0 : index
    %0 = vector.load %arg2[%c0, %c0_0, %c0_1] : memref<1x14x24xbf16, #tpu.memory_space<vmem>>, vector<1x14x24xbf16>
    %1 = vector.shape_cast %0 : vector<1x14x24xbf16> to vector<14x24xbf16>
    %c0_2 = arith.constant 0 : index
    %c0_3 = arith.constant 0 : index
    %c0_4 = arith.constant 0 : index
    %2 = vector.load %arg3[%c0_2, %c0_3, %c0_4] : memref<1x14x256xf32, #tpu.memory_space<vmem>>, vector<1x14x256xf32>
    %3 = vector.shape_cast %2 : vector<1x14x256xf32> to vector<14x256xf32>
    %c0_5 = arith.constant 0 : index
    %c0_6 = arith.constant 0 : index
    %c0_7 = arith.constant 0 : index
    %c0_8 = arith.constant 0 : index
    %4 = vector.load %arg1[%c0_5, %c0_6, %c0_7, %c0_8] : memref<1x1x24x256xbf16, #tpu.memory_space<vmem>>, vector<1x1x24x256xbf16>
    %5 = vector.shape_cast %4 : vector<1x1x24x256xbf16> to vector<24x256xbf16>
    %cst = arith.constant dense<0.000000e+00> : vector<14x256xf32>
    %6 = tpu.matmul %1, %5, %cst {dimension_numbers = #tpu.dot_dimension_numbers<[1], [0], [0], [1], [0, 0, 1, 1], [], []>} : vector<14x24xbf16>, vector<24x256xbf16>, vector<14x256xf32> -> vector<14x256xf32>
    %7 = arith.addf %6, %3 : vector<14x256xf32>
    %c0_9 = arith.constant 0 : index
    %c0_10 = arith.constant 0 : index
    %c0_11 = arith.constant 0 : index
    %c0_12 = arith.constant 0 : index
    %8 = vector.load %arg4[%c0_9, %c0_10, %c0_11, %c0_12] : memref<1x1x14x256xf32, #tpu.memory_space<vmem>>, vector<1x1x14x256xf32>
    %9 = vector.shape_cast %8 : vector<1x1x14x256xf32> to vector<14x256xf32>
    %10 = vector.shape_cast %7 : vector<14x256xf32> to vector<1x1x14x256xf32>
    tpu.vector_store %arg4[%c0_9, %c0_10, %c0_11, %c0_12], %10 {strides = array<i32>} : memref<1x1x14x256xf32, #tpu.memory_space<vmem>>, vector<1x1x14x256xf32>,
    return
  }
  func.func @transform_0(%arg0: i32) -> (i32, i32, i32, i32) {
    %c0_i32 = arith.constant 0 : i32
    %c0_i32_0 = arith.constant 0 : i32
    %c0_i32_1 = arith.constant 0 : i32
    %c0_i32_2 = arith.constant 0 : i32
    return %c0_i32, %arg0, %c0_i32_0, %c0_i32_1 : i32, i32, i32, i32
  }
  func.func @transform_1(%arg0: i32) -> (i32, i32, i32) {
    %c0_i32 = arith.constant 0 : i32
    %c0_i32_0 = arith.constant 0 : i32
    %c0_i32_1 = arith.constant 0 : i32
    return %arg0, %c0_i32, %c0_i32_0 : i32, i32, i32
  }
  func.func @transform_2(%arg0: i32) -> (i32, i32, i32) {
    %c0_i32 = arith.constant 0 : i32
    %c0_i32_0 = arith.constant 0 : i32
    %c0_i32_1 = arith.constant 0 : i32
    return %arg0, %c0_i32, %c0_i32_0 : i32, i32, i32
  }
  func.func @transform_3(%arg0: i32) -> (i32, i32, i32, i32) {
    %c0_i32 = arith.constant 0 : i32
    %c0_i32_0 = arith.constant 0 : i32
    %c0_i32_1 = arith.constant 0 : i32
    %c0_i32_2 = arith.constant 0 : i32
    return %c0_i32, %arg0, %c0_i32_0, %c0_i32_1 : i32, i32, i32, i32
  }
}

</mosaic_0001>

<bundles_post_ra>
// kernel: head_forward.5
= control target key start
LH: loop header
LB: loop body
LE: loop exit
PB: predicated region body
PF: predicated region fallthrough
CT: control target
= control target key end

     0   :  { %s417_s12 = smov 0   ;;  %s453_s0 = inlined_call_operand.vmem [shape: f32[2,32,256], index: 0, kind: input, shape index: {}]   ;;  %s454_s1 = inlined_call_operand.vmem [shape: bf16[24,32], index: 1, kind: input, shape index: {}]   ;;  %s455_s2 = inlined_call_operand.vmem [shape: f32[24,1], index: 2, kind: input, shape index: {}]   ;;  %s456_s3 = inlined_call_operand.vmem [shape: bf16[2,24,256], index: 3, kind: output, shape index: {}]  }
   0x1 LB: > { %s349_s13 = sadd.s32 4294967295, %s394_s12   ;;  %p353_p0 = scmp.ge.s32.totalorder %s394_s12, 1  ;;  %s394_s12 = sphi %s417_s12, %s13_s12  }
   0x2   : > { %p137_p1 = scmp.lt.s32.totalorder %s394_s12, 3 }
   0x4   : > { %p138_p2 = pnand %p353_p0, %p137_p1 }
   0x5   : > { %p161_p3 = scmp.lt.s32.totalorder (!%p138_p2), %s349_s13, 1  ;;  %v396_v0 = vmov (!%p138_p2), 0   ;;  %v187_v1 = vld [vmem:[%s455_s2] sm:$0xff] (!%p138_p2)  ;;  %v189_v2 = vld [vmem:[%s455_s2 + $0x10] sm:$0xff] (!%p138_p2)  ;;  %v188_v3 = vld [vmem:[%s455_s2 + $0x8] sm:$0xff] (!%p138_p2)  ;;  %vm213_vm0 = vcmask (!%p138_p2), 261120  }
   0x6   : > { %141 = sbr.rel (%p138_p2) target bundleno = 247 (0xf7), region = 32  ;;  %252 = vmatprep.mubr.bf16.mxu0 (!%p138_p2), %v396_v0  ;;  %262 = vmatprep.mubr.bf16.mxu1 (!%p138_p2), %v396_v0  ;;  %v386_v16 = vld [vmem:[%s454_s1] sm:$0xff] (!%p138_p2)   ;;  %v387_v17 = vld [vmem:[%s454_s1 + $0x8] ss:$0 sps:$4 sm:$0xff] (!%p138_p2)  }
   0x7   : > { %384 = vset.pattern.permute.xlu0 (!%p138_p2), %v396_v0  ;;  %385 = vset.pattern.permute.xlu1 (!%p138_p2), %v396_v0 }
   0x8   : > { %192 = vperm.xlu0 (!%p138_p2), %384, %v187_v1   ;;  %202 = vperm.xlu1 (!%p138_p2), %385, %v189_v2  }
   0xc   : > { %197 = vperm.xlu0 (!%p138_p2), %384, %v188_v3  }
   0xd   : > { %s458_s13 = smov (!%p161_p3, %s349_s13), 1 }
   0xe   : > { %s366_s18 = sshll.u32 %s458_s13, 6  ;;  %s374_s28 = smul.u32 24, %s458_s13 }
   0xf   : > { %s165_s23 = scalar_lea.vmem %s453_s0, %s366_s18 }
  0x10   : > { %v173_v4 = vld [vmem:[%s165_s23 + $0x8] sm:$0xff]  ;;  %v175_v5 = vld [vmem:[%s165_s23 + $0x18] sm:$0xff]  ;;  %v172_v6 = vld [vmem:[%s165_s23] sm:$0xff]  ;;  %s170_s4 = scalar_lea.vmem %s456_s3, %s374_s28 }
  0x11   : > { %v181_v7 = vpack.c.bf16 %v175_v5, %v173_v4  ;;  %v174_v8 = vld [vmem:[%s165_s23 + $0x10] sm:$0xff]  ;;  %v177_v9 = vld [vmem:[%s165_s23 + $0x28] sm:$0xff]  ;;  %v179_v10 = vld [vmem:[%s165_s23 + $0x38] sm:$0xff] }
  0x12   : > { %v180_v11 = vpack.c.bf16 %v174_v8, %v172_v6  ;;  %v183_v12 = vpack.c.bf16 %v179_v10, %v177_v9  ;;  %v176_v13 = vld [vmem:[%s165_s23 + $0x20] sm:$0xff]  ;;  %v178_v14 = vld [vmem:[%s165_s23 + $0x30] sm:$0xff] }
  0x13   : > { %220 = vmatprep.subr.bf16.mxu0 %v181_v7  ;;  %370 = vmatprep.subr.bf16.mxu1 %v181_v7  ;;  %v182_v15 = vpack.c.bf16 %v178_v14, %v176_v13 }
  0x14   : > { %221 = vmatpush1.bf16.msra.mxu0 %v180_v11  ;;  %372 = vmatpush1.bf16.msra.mxu1 %v180_v11 }
  0x15   : > { %222 = vmatprep.subr.bf16.mxu0 %v183_v12  ;;  %371 = vmatprep.subr.bf16.mxu1 %v183_v12 }
  0x18   : > { %223 = vmatpush1.bf16.msra.mxu0 %v182_v15  ;;  %373 = vmatpush1.bf16.msra.mxu1 %v182_v15 }
  0x1b   : > { %359 = vmatmul.mubr.msk.bf16.vlgmr.msra.gmra.mrb[0].mxu0 %vm213_vm0, %v386_v16  ;;  %360 = vmatmul.mubr.msk.bf16.vlgmr.msra.gmra.mrb[0].mxu1 %vm213_vm0, %v387_v17 }
  0x87   : > { %v193_v18 = vpop.permute.xlu0 %192  ;;  %v203_v19 = vpop.permute.xlu1 %202 }
  0x8b   : > { %v198_v20 = vpop.permute.xlu0 %197 }
  0xee   : > { %v254_v21 = vpop.f32.mrb[0].mxu0  ;;  %v264_v22 = vpop.f32.mrb[0].mxu1 }
  0xef   : > { %v255_v23 = vadd.f32 %v254_v21, %v193_v18  ;;  %v256_v24 = vpop.f32.mrb[1].mxu0  ;;  %v266_v25 = vpop.f32.mrb[1].mxu1  ;;  %v265_v26 = vadd.f32 %v264_v22, %v203_v19 }
  0xf0   : > { %v257_v27 = vadd.f32 %v256_v24, %v193_v18  ;;  %v267_v28 = vadd.f32 %v266_v25, %v203_v19  ;;  %v258_v29 = vpop.f32.mrb[2].mxu0  ;;  %v268_v30 = vpop.f32.mrb[2].mxu1 }
  0xf1   : > { %v259_v31 = vadd.f32 %v258_v29, %v198_v20  ;;  %v260_v32 = vpop.f32.mrb[3].mxu0  ;;  %v269_v33 = vpop.f32.mrb[3].mxu1 }
  0xf2   : > { %v367_v34 = vpack.c.bf16 %v257_v27, %v255_v23  ;;  %v369_v35 = vpack.c.bf16 %v267_v28, %v265_v26  ;;  %v261_v36 = vadd.f32 %v260_v32, %v198_v20 }
  0xf4   : > { %291 = vst [vmem:[%s170_s4] sm:$0xff] %v367_v34  ;;  %293 = vst [vmem:[%s170_s4 + $0x10] sm:$0xff] %v369_v35  ;;  %v368_v37 = vpack.c.bf16 %v261_v36, %v259_v31 }
  0xf6   : > { %292 = vst [vmem:[%s170_s4 + $0x8] sm:$0xff] %v368_v37 }
  0xf7 PF: > { %s13_s12 = sadd.s32 1, %s394_s12  }
  0xf8   : > { %p10_p4 = scmp.ge.s32.totalorder %s13_s12, 4  }
  0xfa   :  { %12 = sbr.rel (!%p10_p4) target bundleno = 1 (0x1), region = 62 }

// kernel: head_forward.4
= control target key start
LH: loop header
LB: loop body
LE: loop exit
PB: predicated region body
PF: predicated region fallthrough
CT: control target
= control target key end

     0   :  { %s417_s12 = smov 0   ;;  %s453_s0 = inlined_call_operand.vmem [shape: f32[4,32,256], index: 0, kind: input, shape index: {}]   ;;  %s454_s1 = inlined_call_operand.vmem [shape: bf16[24,32], index: 1, kind: input, shape index: {}]   ;;  %s455_s2 = inlined_call_operand.vmem [shape: f32[24,1], index: 2, kind: input, shape index: {}]   ;;  %s456_s3 = inlined_call_operand.vmem [shape: bf16[4,24,256], index: 3, kind: output, shape index: {}]  }
   0x1 LB: > { %s349_s13 = sadd.s32 4294967295, %s394_s12   ;;  %p353_p0 = scmp.ge.s32.totalorder %s394_s12, 1  ;;  %s394_s12 = sphi %s417_s12, %s13_s12  }
   0x2   : > { %p137_p1 = scmp.lt.s32.totalorder %s394_s12, 5 }
   0x4   : > { %p138_p2 = pnand %p353_p0, %p137_p1 }
   0x5   : > { %p161_p3 = scmp.lt.s32.totalorder (!%p138_p2), %s349_s13, 3  ;;  %v396_v0 = vmov (!%p138_p2), 0   ;;  %v187_v1 = vld [vmem:[%s455_s2] sm:$0xff] (!%p138_p2)  ;;  %v189_v2 = vld [vmem:[%s455_s2 + $0x10] sm:$0xff] (!%p138_p2)  ;;  %v188_v3 = vld [vmem:[%s455_s2 + $0x8] sm:$0xff] (!%p138_p2)  ;;  %vm213_vm0 = vcmask (!%p138_p2), 261120  }
   0x6   : > { %141 = sbr.rel (%p138_p2) target bundleno = 247 (0xf7), region = 32  ;;  %252 = vmatprep.mubr.bf16.mxu0 (!%p138_p2), %v396_v0  ;;  %262 = vmatprep.mubr.bf16.mxu1 (!%p138_p2), %v396_v0  ;;  %v386_v16 = vld [vmem:[%s454_s1] sm:$0xff] (!%p138_p2)   ;;  %v387_v17 = vld [vmem:[%s454_s1 + $0x8] ss:$0 sps:$4 sm:$0xff] (!%p138_p2)  }
   0x7   : > { %384 = vset.pattern.permute.xlu0 (!%p138_p2), %v396_v0  ;;  %385 = vset.pattern.permute.xlu1 (!%p138_p2), %v396_v0 }
   0x8   : > { %192 = vperm.xlu0 (!%p138_p2), %384, %v187_v1   ;;  %202 = vperm.xlu1 (!%p138_p2), %385, %v189_v2  }
   0xc   : > { %197 = vperm.xlu0 (!%p138_p2), %384, %v188_v3  }
   0xd   : > { %s458_s13 = smov (!%p161_p3, %s349_s13), 3 }
   0xe   : > { %s366_s18 = sshll.u32 %s458_s13, 6  ;;  %s374_s28 = smul.u32 24, %s458_s13 }
   0xf   : > { %s165_s23 = scalar_lea.vmem %s453_s0, %s366_s18 }
  0x10   : > { %v173_v4 = vld [vmem:[%s165_s23 + $0x8] sm:$0xff]  ;;  %v175_v5 = vld [vmem:[%s165_s23 + $0x18] sm:$0xff]  ;;  %v172_v6 = vld [vmem:[%s165_s23] sm:$0xff]  ;;  %s170_s4 = scalar_lea.vmem %s456_s3, %s374_s28 }
  0x11   : > { %v181_v7 = vpack.c.bf16 %v175_v5, %v173_v4  ;;  %v174_v8 = vld [vmem:[%s165_s23 + $0x10] sm:$0xff]  ;;  %v177_v9 = vld [vmem:[%s165_s23 + $0x28] sm:$0xff]  ;;  %v179_v10 = vld [vmem:[%s165_s23 + $0x38] sm:$0xff] }
  0x12   : > { %v180_v11 = vpack.c.bf16 %v174_v8, %v172_v6  ;;  %v183_v12 = vpack.c.bf16 %v179_v10, %v177_v9  ;;  %v176_v13 = vld [vmem:[%s165_s23 + $0x20] sm:$0xff]  ;;  %v178_v14 = vld [vmem:[%s165_s23 + $0x30] sm:$0xff] }
  0x13   : > { %220 = vmatprep.subr.bf16.mxu0 %v181_v7  ;;  %370 = vmatprep.subr.bf16.mxu1 %v181_v7  ;;  %v182_v15 = vpack.c.bf16 %v178_v14, %v176_v13 }
  0x14   : > { %221 = vmatpush1.bf16.msra.mxu0 %v180_v11  ;;  %372 = vmatpush1.bf16.msra.mxu1 %v180_v11 }
  0x15   : > { %222 = vmatprep.subr.bf16.mxu0 %v183_v12  ;;  %371 = vmatprep.subr.bf16.mxu1 %v183_v12 }
  0x18   : > { %223 = vmatpush1.bf16.msra.mxu0 %v182_v15  ;;  %373 = vmatpush1.bf16.msra.mxu1 %v182_v15 }
  0x1b   : > { %359 = vmatmul.mubr.msk.bf16.vlgmr.msra.gmra.mrb[0].mxu0 %vm213_vm0, %v386_v16  ;;  %360 = vmatmul.mubr.msk.bf16.vlgmr.msra.gmra.mrb[0].mxu1 %vm213_vm0, %v387_v17 }
  0x87   : > { %v193_v18 = vpop.permute.xlu0 %192  ;;  %v203_v19 = vpop.permute.xlu1 %202 }
  0x8b   : > { %v198_v20 = vpop.permute.xlu0 %197 }
  0xee   : > { %v254_v21 = vpop.f32.mrb[0].mxu0  ;;  %v264_v22 = vpop.f32.mrb[0].mxu1 }
  0xef   : > { %v255_v23 = vadd.f32 %v254_v21, %v193_v18  ;;  %v256_v24 = vpop.f32.mrb[1].mxu0  ;;  %v266_v25 = vpop.f32.mrb[1].mxu1  ;;  %v265_v26 = vadd.f32 %v264_v22, %v203_v19 }
  0xf0   : > { %v257_v27 = vadd.f32 %v256_v24, %v193_v18  ;;  %v267_v28 = vadd.f32 %v266_v25, %v203_v19  ;;  %v258_v29 = vpop.f32.mrb[2].mxu0  ;;  %v268_v30 = vpop.f32.mrb[2].mxu1 }
  0xf1   : > { %v259_v31 = vadd.f32 %v258_v29, %v198_v20  ;;  %v260_v32 = vpop.f32.mrb[3].mxu0  ;;  %v269_v33 = vpop.f32.mrb[3].mxu1 }
  0xf2   : > { %v367_v34 = vpack.c.bf16 %v257_v27, %v255_v23  ;;  %v369_v35 = vpack.c.bf16 %v267_v28, %v265_v26  ;;  %v261_v36 = vadd.f32 %v260_v32, %v198_v20 }
  0xf4   : > { %291 = vst [vmem:[%s170_s4] sm:$0xff] %v367_v34  ;;  %293 = vst [vmem:[%s170_s4 + $0x10] sm:$0xff] %v369_v35  ;;  %v368_v37 = vpack.c.bf16 %v261_v36, %v259_v31 }
  0xf6   : > { %292 = vst [vmem:[%s170_s4 + $0x8] sm:$0xff] %v368_v37 }
  0xf7 PF: > { %s13_s12 = sadd.s32 1, %s394_s12  }
  0xf8   : > { %p10_p4 = scmp.ge.s32.totalorder %s13_s12, 6  }
  0xfa   :  { %12 = sbr.rel (!%p10_p4) target bundleno = 1 (0x1), region = 62 }

// kernel: head_forward.6
= control target key start
LH: loop header
LB: loop body
LE: loop exit
PB: predicated region body
PF: predicated region fallthrough
CT: control target
= control target key end

     0   :  { %s705_s9 = smov 0   ;;  %s707_s10 = smov 0   ;;  %s779_s0 = inlined_call_operand.vmem [shape: bf16[2,2,24,256], index: 0, kind: input, shape index: {}]   ;;  %s780_s1 = inlined_call_operand.vmem [shape: f32[2,2,1,256], index: 1, kind: input, shape index: {}]   ;;  %s781_s2 = inlined_call_operand.vmem [shape: f32[2,1,24], index: 2, kind: output, shape index: {}]  }
   0x1   :  { %s709_s11 = smov 0  }
   0x2 LB: > { %s600_s12 = sadd.s32 4294967295, %s685_s11   ;;  %s722_s13 = sadd.s32 1, %s685_s11   ;;  %s685_s11 = sphi %s709_s11, %s785_s11   ;;  %s681_s10 = sphi %s707_s10, %s784_s10   ;;  %s677_s9 = sphi %s705_s9, %s783_s9  }
   0x3   : > { %s16_s14 = ssub.s32 %s685_s11, %s722_s13  ;;  %s19_s15 = sadd.s32 1, %s681_s10 }
   0x4   : > { %p17_p0 = scmp.eq.s32.totalorder %s16_s14, 0  ;;  %p26_p1 = scmp.ne.s32.totalorder %s681_s10, %s677_s9 }
   0x5   : > { %p27_p2 = scmp.eq.s32.totalorder %s685_s11, 0  ;;  %p603_p4 = scmp.ge.s32.totalorder %s685_s11, 2 }
   0x6   : > { %s731_s16 = scalar_select %p17_p0, %s681_s10, %s19_s15  }
   0x7   : > { %p733_p3 = por %p27_p2, %p26_p1  ;;  %104 = sbr.rel (%p603_p4) target bundleno = 29 (0x1d), region = 16 }
   0xe   : > { %107 = sbr.rel (!%p733_p3) target bundleno = 22 (0x16), region = 20  ;;  %s109_s18 = sand.u32 (%p733_p3), 1, %s681_s10  }
   0xf   : > { %s624_s19 = smul.u32 (%p733_p3), 24, %s685_s11 }
  0x10   : > { %s623_s20 = smul.u32 (%p733_p3), 48, %s109_s18 }
  0x11   : > { %s114_s23 = scalar_lea.vmem (%p733_p3), %s779_s0, %s624_s19 }
  0x12   : > { %v152_v0 = vld [vmem:[%s114_s23] sm:$0xff] (%p733_p3)  ;;  %v154_v1 = vld [vmem:[%s114_s23 + $0x8] sm:$0xff] (%p733_p3)  ;;  %v156_v2 = vld [vmem:[%s114_s23 + $0x10] sm:$0xff] (%p733_p3)  ;;  %s111_s24 = scalar_lea.vmem (%p733_p3), [#allocation2], %s623_s20 }
  0x13   : > { %153 = vst [vmem:[%s111_s24] sm:$0xff] (%p733_p3), %v152_v0  ;;  %155 = vst [vmem:[%s111_s24 + $0x8] sm:$0xff] (%p733_p3), %v154_v1  ;;  %v158_v3 = vld [vmem:[%s114_s23 + $0x30] sm:$0xff] (%p733_p3)  ;;  %v160_v4 = vld [vmem:[%s114_s23 + $0x38] sm:$0xff] (%p733_p3) }
  0x14   : > { %157 = vst [vmem:[%s111_s24 + $0x10] sm:$0xff] (%p733_p3), %v156_v2  ;;  %v162_v5 = vld [vmem:[%s114_s23 + $0x40] sm:$0xff] (%p733_p3)  ;;  %159 = vst [vmem:[%s111_s24 + $0x18] sm:$0xff] (%p733_p3), %v158_v3 }
  0x15   : > { %161 = vst [vmem:[%s111_s24 + $0x20] sm:$0xff] %v160_v4  ;;  %163 = vst [vmem:[%s111_s24 + $0x28] sm:$0xff] %v162_v5 }
  0x16 PF: > { %169 = sbr.rel (!%p733_p3) target bundleno = 29 (0x1d), region = 58  ;;  %s171_s25 = sand.u32 (%p733_p3), 1, %s681_s10  }
  0x17   : > { %s606_s26 = sshll.u32 (%p733_p3), %s685_s11, 1  ;;  %s605_s27 = sshll.u32 (%p733_p3), %s171_s25, 2 }
  0x18   : > { %s175_s30 = scalar_lea.vmem (%p733_p3), %s780_s1, %s606_s26  ;;  %s173_s3 = scalar_lea.vmem (%p733_p3), [#allocation3], %s605_s27 }
  0x19   : > { %v191_v6 = vld [vmem:[%s175_s30] sm:$0x3] (%p733_p3)  ;;  %v193_v7 = vld [vmem:[%s175_s30 + $0x4] sm:$0x3] (%p733_p3) }
  0x1a   : > { %192 = vst [vmem:[%s173_s3] sm:$0x3] (%p733_p3), %v191_v6  ;;  %194 = vst [vmem:[%s173_s3 + $0x2] sm:$0x3] (%p733_p3), %v193_v7 }
  0x1d PF: > { %p607_p5 = scmp.ge.s32.totalorder %s685_s11, 1  ;;  %p212_p6 = scmp.lt.s32.totalorder %s685_s11, 3 }
  0x1f   : > { %p213_p7 = pnand %p607_p5, %p212_p6 }
  0x20   : > { %s219_s4 = sand.u32 (!%p213_p7), 1, %s677_s9   ;;  %v687_v28 = vmov (!%p213_p7), 1966171168   ;;  %v308_v30 = vlaneseq (!%p213_p7)  ;;  %vm504_vm0 = vcmask (!%p213_p7), 1040384   ;;  %vm500_vm1 = vcmask (!%p213_p7), 188416   ;;  %p249_p9 = scmp.lt.s32.totalorder (!%p213_p7), %s600_s12, 1 }
  0x21   : > { %216 = sbr.rel (%p213_p7) target bundleno = 293 (0x125), region = 92  ;;  %v306_v29 = vunpack.c.l.s4 (!%p213_p7), %v687_v28  ;;  %s608_s7 = sshll.u32 (!%p213_p7), %s219_s4, 2 }
  0x22   : > { %s625_s5 = smul.u32 (!%p213_p7), 48, %s219_s4  ;;  %v309_v40 = vshrl.u32 (!%p213_p7), %v308_v30, 7  ;;  %s228_s8 = scalar_lea.vmem (!%p213_p7), [#allocation3], %s608_s7 }
  0x23   : > { %v307_v39 = vunpack.c.0.s8 (!%p213_p7), %v306_v29  ;;  %v270_v55 = vld [vmem:[%s228_s8] sm:$0x3] (!%p213_p7)  ;;  %v271_v57 = vld [vmem:[%s228_s8 + $0x2] sm:$0x3] (!%p213_p7)  ;;  %s688_s14 = smov (!%p213_p7), 1e-06  }
  0x24   : > { %s221_s6 = scalar_lea.vmem (!%p213_p7), [#allocation2], %s625_s5  ;;  %v341_v59 = vsub.s32 (!%p213_p7), 0, %v309_v40  ;;  %v345_v60 = vsub.s32 (!%p213_p7), 1, %v309_v40  ;;  %s689_s17 = smov (!%p213_p7), -1e-06  }
  0x25   : > { %v655_v8 = vld [vmem:[%s221_s6 + $0x4] ss:$8 sps:$4 sm:$0xff] (!%p213_p7)   ;;  %v659_v10 = vld [vmem:[%s221_s6] ss:$8 sps:$4 sm:$0xff] (!%p213_p7)   ;;  %v254_v12 = vld [vmem:[%s221_s6 + $0x10] sm:$0xff] (!%p213_p7)  ;;  %v310_v49 = vsub.s32 (!%p213_p7), %v307_v39, %v309_v40 }
  0x26   : > { %v657_v9 = vld [vmem:[%s221_s6 + $0x1c] ss:$8 sps:$4 sm:$0xff] (!%p213_p7)   ;;  %612 = vmatprep.subr.bf16.mxu0 (!%p213_p7), %v655_v8  ;;  %v660_v11 = vld [vmem:[%s221_s6 + $0x18] ss:$8 sps:$4 sm:$0xff] (!%p213_p7)   ;;  %v262_v13 = vunpack.c.l.bf16 (!%p213_p7), %v254_v12  ;;  %v263_v14 = vunpack.c.h.bf16 (!%p213_p7), %v254_v12  ;;  %v257_v15 = vld [vmem:[%s221_s6 + $0x28] sm:$0xff] (!%p213_p7) }
  0x27   : > { %616 = vmatprep.subr.bf16.mxu1 (!%p213_p7), %v657_v9  ;;  %614 = vmatpush1.bf16.xpose.msra.mxu0 (!%p213_p7), %v659_v10  ;;  %v268_v16 = vunpack.c.l.bf16 (!%p213_p7), %v257_v15  ;;  %v269_v17 = vunpack.c.h.bf16 (!%p213_p7), %v257_v15 }
  0x28   : > { %618 = vmatpush1.bf16.xpose.msra.mxu1 %v660_v11  ;;  %v272_v18 = vrot.slane %v262_v13, 4  ;;  %v278_v19 = vrot.slane %v263_v14, 4  ;;  %353 = vmatprep.subr.mxu0 %v263_v14  ;;  %s789_s12 = smov (!%p249_p9, %s600_s12), 1 }
  0x29   : > { %v284_v20 = vrot.slane %v268_v16, 4  ;;  %v290_v21 = vrot.slane %v269_v17, 4  ;;  %434 = vmatprep.subr.mxu1 %v269_v17  ;;  %s251_s21 = scalar_lea.vmem %s781_s2, %s789_s12 }
  0x2a   : > { %v273_v22 = vadd.f32 %v272_v18, %v262_v13  ;;  %v279_v23 = vadd.f32 %v278_v19, %v263_v14 }
  0x2b   : > { %v285_v24 = vadd.f32 %v284_v20, %v268_v16  ;;  %v291_v25 = vadd.f32 %v290_v21, %v269_v17 }
  0x2c   : > { %v274_v26 = vrot.slane %v273_v22, 2  ;;  %v280_v27 = vrot.slane %v279_v23, 2 }
  0x2d   : > { %v286_v31 = vrot.slane %v285_v24, 2  ;;  %v292_v32 = vrot.slane %v291_v25, 2 }
  0x2e   : > { %v275_v33 = vadd.f32 %v274_v26, %v273_v22  ;;  %v281_v34 = vadd.f32 %v280_v27, %v279_v23 }
  0x2f   : > { %v287_v35 = vadd.f32 %v286_v31, %v285_v24  ;;  %v293_v36 = vadd.f32 %v292_v32, %v291_v25  ;;  %354 = vmatpush1.xpose.msra.mxu0 %v262_v13 }
  0x30   : > { %435 = vmatpush1.xpose.msra.mxu1 %v268_v16  ;;  %v276_v37 = vrot.slane %v275_v33, 1  ;;  %v282_v38 = vrot.slane %v281_v34, 1 }
  0x31   : > { %v288_v41 = vrot.slane %v287_v35, 1  ;;  %v294_v42 = vrot.slane %v293_v36, 1 }
  0x32   : > { %v277_v43 = vadd.f32 %v276_v37, %v275_v33  ;;  %v283_v44 = vadd.f32 %v282_v38, %v281_v34 }
  0x33   : > { %v295_v45 = vadd.f32 %v294_v42, %v293_v36  ;;  %v289_v46 = vadd.f32 %v288_v41, %v287_v35 }
  0x34   : > { %v296_v47 = vmul.f32 0.0125, %v277_v43  ;;  %v297_v48 = vmul.f32 0.0125, %v283_v44 }
  0x35   : > { %v298_v50 = vmul.f32 0.0125, %v289_v46  ;;  %v299_v51 = vmul.f32 0.0125, %v295_v45 }
  0x36   : > { %v304_v52 = vcombine.low %v296_v47, %v297_v48 }
  0x37   : > { %v319_v53 = vcombine.low %v298_v50, %v299_v51 }
  0x38   : > { %v311_v54 = vrot.slane %v304_v52, %v310_v49 }
  0x39   : > { %v326_v56 = vrot.slane %v319_v53, %v310_v49 }
  0x3a   : > { %v318_v58 = vrot.slane %v311_v54, %v310_v49 }
  0x3b   : > { %v333_v61 = vrot.slane %v326_v56, %v310_v49 }
  0x3c   : > { %v336_v62 = vadd.f32 %v318_v58, %v270_v55 }
  0x3d   : > { %v337_v63 = vadd.f32 %v333_v61, %v271_v57 }
  0x3e   : > { %v342_v0 = vrot.slane %v336_v62, %v341_v59  ;;  %v346_v1 = vrot.slane %v336_v62, %v345_v60 }
  0x3f   : > { %v423_v2 = vrot.slane %v337_v63, %v341_v59  ;;  %v427_v3 = vrot.slane %v337_v63, %v345_v60 }
  0x40   : > { %v505_v4 = vsel %vm504_vm0, %v342_v0, 0.0  ;;  %v506_v5 = vsel %vm504_vm0, %v346_v1, 0.0  ;;  %413 = vmatprep.mubr.f32.mxu0 %v346_v1 }
  0x41   : > { %v507_v6 = vadd.f32 %v506_v5, %v505_v4  ;;  %v508_v7 = vsel %vm504_vm0, %v423_v2, 0.0  ;;  %494 = vmatprep.mubr.f32.mxu1 %v427_v3  ;;  %414 = vmatmul.mubr.f32.vlgmr.msra.gmra.mrb[0].mxu0 %v342_v0  ;;  %v510_v8 = vsel %vm504_vm0, %v427_v3, 0.0 }
  0x42   : > { %495 = vmatmul.mubr.f32.vlgmr.msra.gmra.mrb[0].mxu1 %v423_v2 }
  0x43   : > { %v509_v9 = vadd.f32 %v508_v7, %v507_v6 }
  0x45   : > { %v511_v10 = vadd.f32 %v510_v8, %v509_v9 }
  0x47   : > { %512 = vadd.xlane.f32.xlu0 %v511_v10 }
  0xd4   : > { %v513_v11 = vpop.xlane.xlu0 %512 }
  0xd5   : > { %v514_v12 = vrot.slane %v513_v11, 4 }
  0xd7   : > { %v515_v13 = vadd.f32 %v514_v12, %v513_v11 }
  0xd9   : > { %v516_v14 = vrot.slane %v515_v13, 2 }
  0xdb   : > { %v517_v15 = vadd.f32 %v516_v14, %v515_v13 }
  0xdd   : > { %v518_v16 = vrot.slane %v517_v15, 1 }
  0xdf   : > { %v519_v17 = vadd.f32 %v518_v16, %v517_v15 }
  0xe1   : > { %626 = vpush %v519_v17 }
 0x112   : > { %s627_s9 = spop %626 }
 0x113   : > { %p521_p8 = scmp.ge.f32.partialorder %s627_s9, 0.0  ;;  %s522_s15 = smax.f32 %s688_s14, %s627_s9 }
 0x114   : > { %s523_s18 = smin.f32 %s689_s17, %s627_s9  ;;  %v415_v18 = vpop.f32.mrb[0].mxu0 }
 0x115   : > { %s787_s15 = smov (!%p521_p8, %s522_s15), %s523_s18  ;;  %v501_v19 = vsel %vm500_vm1, %v415_v18, 0.0  ;;  %v496_v20 = vpop.f32.mrb[0].mxu1  ;;  %v417_v21 = vpop.f32.mrb[1].mxu0 }
 0x116   : > { %v502_v22 = vsel %vm500_vm1, %v496_v20, 0.0  ;;  %v498_v23 = vpop.f32.mrb[1].mxu1  ;;  %v525_v24 = vstv %s787_s15 }
 0x117   : > { %v503_v25 = vadd.f32 %v502_v22, %v501_v19  ;;  %661 = vrcp.f32 %v525_v24 }
 0x121   : > { %v662_v26 = vpop.eup %661 }
 0x122   : > { %v527_v27 = vmul.f32 %v662_v26, %v503_v25 }
 0x124   : > { %528 = vst.msk [vmem:[%s251_s21] sm:$0x1] %vm500_vm1, %v527_v27 }
 0x125 PF: > { %p9_p10 = scmp.ge.s32.totalorder %s722_s13, 4   ;;  %s783_s9 = smov %s681_s10 }
 0x126   : > { %s784_s10 = smov %s731_s16  ;;  %s785_s11 = smov %s722_s13 }
 0x127   :  { %11 = sbr.rel (!%p9_p10) target bundleno = 2 (0x2), region = 143 }

// kernel: squeeze.6
= control target key start
LH: loop header
LB: loop body
LE: loop exit
PB: predicated region body
PF: predicated region fallthrough
CT: control target
= control target key end

     0   :  { %s149_s0 = inlined_call_operand.vmem [shape: f32[2,256], index: 0, kind: input, shape index: {}]   ;;  %s150_s1 = inlined_call_operand.hbm [shape: f32[1,2,16,16], index: 1, kind: output, shape index: {}]  }
   0x1   :  { %v71_v0 = vld [vmem:[%s149_s0 + $0x2] sm:$0x3]  ;;  %v9_v1 = vld [vmem:[%s149_s0] sm:$0x3] }
   0x2   :  { %8 = vst [vmem:[#allocation2 + $0x8] sm:$0x3] %v71_v0  ;;  %10 = vst [vmem:[#allocation2] sm:$0x3] %v9_v1 }
   0x3   :  { %2 = vsyncpa [#allocation1], 0  ;;  %vm12_vm0 = vcmask 130048   ;;  %s104_s0 = smov 112   ;;  %s105_s10 = smov 80  }
   0x4   :  { %s106_s11 = smov 96   ;;  %s107_s12 = smov 64  }
   0x5   :  { %s108_s13 = smov 48   ;;  %s109_s14 = smov 32  }
   0x6   :  { %s110_s15 = smov 16   ;;  %s111_s16 = smov [#allocation0]  }
   0x7   :  { %s65_s17 = sshll.u32 %s111_s16, 4  ;;  %s66_s17 = int_to_ptr.vmem [resolvable:$true] %s65_s17 }
   0x8   :  { %s80_s18 = scalar_lea.vmem %s66_s17, 512  ;;  %p85_p1 = scmp.lt.s32.totalorder %s66_s17, %s66_s17 }
   0x9   :  { %v19_v2 = vld.sshfl [vmem:[#allocation2] sm:$0xff pattern:$0x99999180]   ;;  %p81_p0 = scmp.ne.s32.totalorder %s66_s17, %s80_s18  ;;  %p86_p2 = scmp.lt.s32.totalorder %s80_s18, %s80_s18 }
   0xa   :  { %v11_v3 = vld [vmem:[#allocation2] sm:$0x3]   ;;  %20 = vrot.lane.b32.xlu0 %v19_v2, %s104_s0  ;;  %32 = vrot.lane.b32.xlu1 %v19_v2, %s105_s10  ;;  %v15_v4 = vld [vmem:[#allocation2 + $0x8] sm:$0x3]  }
   0xb   :  { %13 = vst.msk [vmem:[#allocation0] ss:$16 sm:$0x3] %vm12_vm0, %v11_v3   ;;  %18 = vst.msk [vmem:[#allocation0 + $0x8] ss:$16 sm:$0x3] %vm12_vm0, %v15_v4   ;;  %p87_p3 = por %p86_p2, %p85_p1 }
   0xd   :  { %p88_p4 = pnand %p87_p3, %p81_p0 }
   0xe   :  { %26 = vrot.lane.b32.xlu0 %v19_v2, %s106_s11  ;;  %38 = vrot.lane.b32.xlu1 %v19_v2, %s107_s12 }
  0x12   :  { %44 = vrot.lane.b32.xlu0 %v19_v2, %s108_s13  ;;  %50 = vrot.lane.b32.xlu1 %v19_v2, %s109_s14 }
  0x16   :  { %56 = vrot.lane.b32.xlu0 %v19_v2, %s110_s15 }
  0x7c   :  { %v21_v5 = vpop.permute.xlu0 %20   ;;  %v33_v6 = vpop.permute.xlu1 %32  }
  0x7d   :  { %24 = vst.msk [vmem:[#allocation0 + $0x1] ss:$8 sm:$0xf] %vm12_vm0, %v21_v5   ;;  %36 = vst.msk [vmem:[#allocation0 + $0x3] ss:$8 sm:$0xf] %vm12_vm0, %v33_v6  }
  0x80   :  { %v27_v7 = vpop.permute.xlu0 %26   ;;  %v39_v8 = vpop.permute.xlu1 %38  }
  0x81   :  { %30 = vst.msk [vmem:[#allocation0 + $0x2] ss:$8 sm:$0xf] %vm12_vm0, %v27_v7   ;;  %42 = vst.msk [vmem:[#allocation0 + $0x4] ss:$8 sm:$0xf] %vm12_vm0, %v39_v8  }
  0x84   :  { %v45_v9 = vpop.permute.xlu0 %44   ;;  %v51_v10 = vpop.permute.xlu1 %50  }
  0x85   :  { %48 = vst.msk [vmem:[#allocation0 + $0x5] ss:$8 sm:$0xf] %vm12_vm0, %v45_v9   ;;  %54 = vst.msk [vmem:[#allocation0 + $0x6] ss:$8 sm:$0xf] %vm12_vm0, %v51_v10  }
  0x88   :  { %v57_v11 = vpop.permute.xlu0 %56  }
  0x89   :  { %60 = vst.msk [vmem:[#allocation0 + $0x7] ss:$8 sm:$0xf] %vm12_vm0, %v57_v11  }
  0x8a   :  { %91 = shalt.err (!%p88_p4)
}
  0x8b   :  { %s92_s21 = scalar_lea.hbm %s150_s1, 512 }
  0x8c   :  { %p93_p5 = scmp.ne.s32.totalorder %s150_s1, %s92_s21  ;;  %p96_p6 = scmp.lt.u32.totalorder %s92_s21, %s150_s1 }
  0x8e   :  { %p98_p7 = pnand %p96_p6, %p93_p5 }
  0x90   :  { %101 = shalt.err (!%p98_p7)
}
  0x91   :  { %68 = dma.vmem_to_hbm [thread:$0]  %s66_s17, 512, %s150_s1, [#allocation1]  }
  0x92   :  { %102 = dma.done.wait [#allocation1], 512  }
  0x93   :  { %103 = vsyncadd [#allocation1], 4294966784 }
  0x94   :  { %70 = vsyncpa [#allocation1], 1 }

// kernel: head_forward.7
= control target key start
LH: loop header
LB: loop body
LE: loop exit
PB: predicated region body
PF: predicated region fallthrough
CT: control target
= control target key end

     0   :  { %s447_s12 = smov 0   ;;  %s470_s0 = inlined_call_operand.vmem [shape: bf16[1,2,24,256], index: 0, kind: input, shape index: {}]   ;;  %s471_s1 = inlined_call_operand.vmem [shape: bf16[2,14,24], index: 1, kind: input, shape index: {}]   ;;  %s472_s2 = inlined_call_operand.vmem [shape: f32[2,14,256], index: 2, kind: input, shape index: {}]   ;;  %s473_s3 = inlined_call_operand.vmem [shape: f32[1,2,14,256], index: 3, kind: output, shape index: {}]  }
   0x1 LB: > { %s378_s13 = sadd.s32 4294967295, %s424_s12   ;;  %p382_p0 = scmp.ge.s32.totalorder %s424_s12, 1  ;;  %s424_s12 = sphi %s447_s12, %s13_s12  }
   0x2   : > { %p157_p1 = scmp.lt.s32.totalorder %s424_s12, 3 }
   0x4   : > { %p158_p2 = pnand %p382_p0, %p157_p1 }
   0x5   : > { %p191_p3 = scmp.lt.s32.totalorder (!%p158_p2), %s378_s13, 1  ;;  %v426_v0 = vmov (!%p158_p2), 0   ;;  %vm245_vm0 = vcmask (!%p158_p2), 1043456   ;;  %vm241_vm1 = vcmask (!%p158_p2), 195584  }
   0x6   : > { %161 = sbr.rel (%p158_p2) target bundleno = 244 (0xf4), region = 32  ;;  %284 = vmatprep.mubr.bf16.mxu0 (!%p158_p2), %v426_v0 }
   0xd   : > { %s475_s13 = smov (!%p191_p3, %s378_s13), 1 }
   0xe   : > { %s402_s14 = smul.u32 24, %s475_s13  ;;  %s399_s15 = sshll.u32 %s475_s13, 3 }
   0xf   : > { %s200_s18 = scalar_lea.vmem %s471_s1, %s399_s15  ;;  %s400_s22 = sshll.u32 %s475_s13, 5 }
  0x10   : > { %s195_s21 = scalar_lea.vmem %s470_s0, %s402_s14  ;;  %v417_v7 = vld [vmem:[%s200_s18] sm:$0x7f]   ;;  %s205_s25 = scalar_lea.vmem %s472_s2, %s400_s22 }
  0x11   : > { %v220_v1 = vld [vmem:[%s195_s21 + $0x10] sm:$0xff]  ;;  %v412_v2 = vld [vmem:[%s195_s21 + $0x4] ss:$8 sps:$4 sm:$0xff]   ;;  %v415_v4 = vld [vmem:[%s195_s21] ss:$8 sps:$4 sm:$0xff]   ;;  %s210_s28 = scalar_lea.vmem %s473_s3, %s400_s22 }
  0x12   : > { %v394_v3 = vcombine.high %v220_v1, %v220_v1  ;;  %v393_v5 = vcombine.low %v220_v1, %v220_v1  ;;  %252 = vmatprep.subr.bf16.mxu0 %v412_v2  ;;  %v214_v8 = vld [vmem:[%s205_s25] sm:$0xff]  ;;  %v215_v9 = vld [vmem:[%s205_s25 + $0x8] sm:$0xff]  ;;  %v216_v11 = vld [vmem:[%s205_s25 + $0x10] sm:$0x3f] }
  0x13   : > { %253 = vmatpush1.bf16.msra.mxu0 %v415_v4  ;;  %v217_v14 = vld [vmem:[%s205_s25 + $0x18] sm:$0x3f] }
  0x14   : > { %395 = vmatprep.subr.msk.bf16.mxu0 %vm245_vm0, %v394_v3  ;;  %v247_v6 = vsel %vm245_vm0, %v393_v5, 0 }
  0x17   : > { %255 = vmatpush1.bf16.msra.mxu0 %v247_v6 }
  0x1a   : > { %396 = vmatmul.mubr.msk.bf16.vlgmr.msra.gmra.mrb[0].mxu0 %vm241_vm1, %v417_v7 }
  0xed   : > { %v286_v10 = vpop.f32.mrb[0].mxu0 }
  0xee   : > { %v287_v12 = vadd.f32 %v286_v10, %v214_v8  ;;  %v288_v13 = vpop.f32.mrb[1].mxu0 }
  0xef   : > { %v289_v15 = vadd.f32 %v288_v13, %v215_v9  ;;  %v290_v16 = vpop.f32.mrb[2].mxu0 }
  0xf0   : > { %295 = vst [vmem:[%s210_s28] sm:$0xff] %v287_v12  ;;  %v291_v17 = vadd.f32 %v290_v16, %v216_v11  ;;  %v292_v18 = vpop.f32.mrb[3].mxu0 }
  0xf1   : > { %296 = vst [vmem:[%s210_s28 + $0x8] sm:$0xff] %v289_v15  ;;  %v293_v19 = vadd.f32 %v292_v18, %v217_v14 }
  0xf2   : > { %297 = vst [vmem:[%s210_s28 + $0x10] sm:$0x3f] %v291_v17 }
  0xf3   : > { %298 = vst [vmem:[%s210_s28 + $0x18] sm:$0x3f] %v293_v19 }
  0xf4 PF: > { %s13_s12 = sadd.s32 1, %s424_s12  }
  0xf5   : > { %p10_p4 = scmp.ge.s32.totalorder %s13_s12, 4  }
  0xf7   :  { %12 = sbr.rel (!%p10_p4) target bundleno = 1 (0x1), region = 68 }

</bundles_post_ra>
